<compile_context>
chip_gen: v6e
topology: v6e:2x2x1
jax: 0.10.0
libtpu: 0.0.40
codegen_flags: <defaults>
</compile_context>

<pallas_src>
import functools
import math

import jax
import jax.numpy as jnp
from jax import lax
from jax.experimental import pallas as pl
from jax.experimental.pallas import tpu as pltpu


def _round_up(x, m):
    return ((x + m - 1) // m) * m


def _matmul_bias_kernel_f32out(x_ref, w_ref, b_ref, o_ref):
    """One (tm, tn) output tile; o_ref (f32) is resident across the K axis and
    doubles as the accumulator. Bias is folded into the k==0 init."""
    k = pl.program_id(2)

    @pl.when(k == 0)
    def _():
        o_ref[...] = jnp.broadcast_to(
            b_ref[...].astype(jnp.float32), o_ref.shape
        )

    # weight tile is [tn, tk]; contract K with K (== X @ W^T) so no HBM-level
    # transpose of the weight is ever materialized.
    o_ref[...] += lax.dot_general(
        x_ref[...], w_ref[...],
        dimension_numbers=(((1,), (1,)), ((), ())),
        preferred_element_type=jnp.float32,
    )


def _matmul_bias_kernel_lowp_out(x_ref, w_ref, b_ref, o_ref, acc_ref):
    """Same as above, but with an f32 scratch accumulator for bf16/fp16 outputs."""
    k = pl.program_id(2)

    @pl.when(k == 0)
    def _():
        acc_ref[...] = jnp.broadcast_to(
            b_ref[...].astype(jnp.float32), acc_ref.shape
        )

    acc_ref[...] += lax.dot_general(
        x_ref[...], w_ref[...],
        dimension_numbers=(((1,), (1,)), ((), ())),
        preferred_element_type=jnp.float32,
    )

    @pl.when(k == pl.num_programs(2) - 1)
    def _():
        o_ref[...] = acc_ref[...].astype(o_ref.dtype)


@functools.partial(jax.jit, static_argnames=("tm", "tn", "tk"))
def column_parallel_linear(x, weight, bias, *, tm=None, tn=None, tk=None):
    """Y = X @ weight.T + bias.

    x:      [batch, seq, K]
    weight: [N, K]   (module layout; NOT pre-transposed)
    bias:   [N]
    """
    B, S, K = x.shape
    N, K_w = weight.shape
    assert K == K_w, (K, K_w)
    assert bias.shape == (N,), bias.shape
    M = B * S

    out_dtype = jnp.result_type(x.dtype, weight.dtype)
    in_bytes = max(x.dtype.itemsize, weight.dtype.itemsize)

    # MXU-aligned tile defaults sized for the smallest-VMEM generation (v7x).
    # bf16 inputs -> bigger K/N tiles (halved HBM traffic, 2x256x256 MXU).
    if in_bytes <= 2:
        tm_d, tn_d, tk_d = 512, 1024, 2048
    else:
        tm_d, tn_d, tk_d = 512, 512, 1024
    tm = tm if tm is not None else min(tm_d, _round_up(M, 8))
    tn = tn if tn is not None else min(tn_d, _round_up(N, 128))
    tk = tk if tk is not None else min(tk_d, _round_up(K, 128))
    tm = _round_up(tm, 8)      # sublane constraint
    tn = _round_up(tn, 128)    # lane-dense output stores (unmasked vst)
    tk = _round_up(tk, 128)

    Mp, Np, Kp = _round_up(M, tm), _round_up(N, tn), _round_up(K, tk)

    x2d = x.reshape(M, K)
    if (Mp, Kp) != (M, K):
        x2d = jnp.pad(x2d, ((0, Mp - M), (0, Kp - K)))
    w = weight
    if (Np, Kp) != (N, K):
        w = jnp.pad(w, ((0, Np - N), (0, Kp - K)))
    b2d = bias.reshape(1, N)
    if Np != N:
        b2d = jnp.pad(b2d, ((0, 0), (0, Np - N)))

    grid = (Mp // tm, Np // tn, Kp // tk)

    out_is_f32 = out_dtype == jnp.float32
    kernel = _matmul_bias_kernel_f32out if out_is_f32 else _matmul_bias_kernel_lowp_out
    scratch = [] if out_is_f32 else [pltpu.VMEM((tm, tn), jnp.float32)]

    # Double-buffered VMEM footprint -> explicit limit with headroom,
    # capped well below the v7x per-core VMEM size.
    vmem_est = (2 * tm * tk * x.dtype.itemsize
                + 2 * tn * tk * weight.dtype.itemsize
                + 2 * tm * tn * out_dtype.itemsize
                + 2 * tn * bias.dtype.itemsize
                + (0 if out_is_f32 else tm * tn * 4))
    vmem_limit = min(max(int(vmem_est * 1.5) + (4 << 20), 32 << 20), 48 << 20)

    cost = pl.CostEstimate(
        flops=2 * M * N * K,
        transcendentals=0,
        bytes_accessed=(x.size * x.dtype.itemsize
                        + weight.size * weight.dtype.itemsize
                        + bias.size * bias.dtype.itemsize
                        + M * N * out_dtype.itemsize),
    )

    out2d = pl.pallas_call(
        kernel,
        out_shape=jax.ShapeDtypeStruct((Mp, Np), out_dtype),
        grid_spec=pltpu.PrefetchScalarGridSpec(
            num_scalar_prefetch=0,
            grid=grid,
            in_specs=[
                pl.BlockSpec((tm, tk), lambda i, j, k: (i, k)),   # X tile
                pl.BlockSpec((tn, tk), lambda i, j, k: (j, k)),   # W tile ([N, K])
                pl.BlockSpec((1, tn), lambda i, j, k: (0, j)),    # bias tile
            ],
            out_specs=pl.BlockSpec((tm, tn), lambda i, j, k: (i, j)),
            scratch_shapes=scratch,
        ),
        compiler_params=pltpu.CompilerParams(
            dimension_semantics=("parallel", "parallel", "arbitrary"),
            vmem_limit_bytes=vmem_limit,
        ),
        cost_estimate=cost,
    )(x2d, w, b2d)

    if (Mp, Np) != (M, N):
        out2d = out2d[:M, :N]
    return out2d.reshape(B, S, N)


def init_params(key, input_size, output_size, dtype=jnp.float32):
    """Deterministic init matching the module's defaults:
    kaiming_uniform_(a=sqrt(5)) for weight, uniform(-1/sqrt(fan_in), ..) for bias."""
    kw, kb = jax.random.split(key)
    fan_in = input_size
    gain = math.sqrt(2.0 / (1.0 + 5.0))
    w_bound = gain * math.sqrt(3.0 / fan_in)
    weight = jax.random.uniform(
        kw, (output_size, input_size), dtype=dtype, minval=-w_bound, maxval=w_bound
    )
    b_bound = 1.0 / math.sqrt(fan_in) if fan_in > 0 else 0.0
    bias = jax.random.uniform(
        kb, (output_size,), dtype=dtype, minval=-b_bound, maxval=b_bound
    )
    return weight, bias


if __name__ == "__main__":
    # TODO(synk): tensor-parallel collectives (all-gather of outputs / grad
    # all-reduce) are identity at world_size==1 and are not implemented here.
    key = jax.random.PRNGKey(0)
    k_in, k_params, k_in2, k_params2 = jax.random.split(key, 4)

    # Small shapes consistent with the module: [batch, sequence, hidden].
    batch, seq, hidden = 2, 8, 32
    output_size = 64
    x = jax.random.normal(k_in, (batch, seq, hidden), dtype=jnp.float32)
    weight, bias = init_params(k_params, hidden, output_size, dtype=jnp.float32)

    y = jax.block_until_ready(column_parallel_linear(x, weight, bias))
    y_ref = jnp.einsum("bsk,nk->bsn", x, weight) + bias
    assert y.shape == (batch, seq, output_size)
    assert jnp.allclose(y, y_ref, atol=1e-5, rtol=1e-5)

    # Second check with non-tile-aligned shapes (exercises the padding path).
    b2, s2, h2, n2 = 2, 5, 96, 200
    x2 = jax.random.normal(k_in2, (b2, s2, h2), dtype=jnp.float32)
    w2, bi2 = init_params(k_params2, h2, n2, dtype=jnp.float32)
    y2 = jax.block_until_ready(column_parallel_linear(x2, w2, bi2))
    y2_ref = jnp.einsum("bsk,nk->bsn", x2, w2) + bi2
    assert y2.shape == (b2, s2, n2)
    assert jnp.allclose(y2, y2_ref, atol=1e-4, rtol=1e-4)

    print("KERNEL_OK")
</pallas_src>

<mosaic_0001>
module attributes {stable_mosaic.version = 11 : i64} {
  func.func @_matmul_bias_kernel_f32out(%arg0: i32, %arg1: i32, %arg2: i32, %arg3: memref<16x128xf32, #tpu.memory_space<vmem>>, %arg4: memref<128x128xf32, #tpu.memory_space<vmem>>, %arg5: memref<1x128xf32, #tpu.memory_space<vmem>>, %arg6: memref<16x128xf32, #tpu.memory_space<vmem>>) attributes {dimension_semantics = [#tpu.dimension_semantics<parallel>, #tpu.dimension_semantics<parallel>, #tpu.dimension_semantics<arbitrary>], iteration_bounds = array<i64: 1, 1, 1>, scalar_prefetch = 0 : i64, scratch_operands = 0 : i64, tpu.core_type = #tpu.core_type<tc>, window_params = [{transform_indices = @transform_0, window_bounds = array<i64: 16, 128>}, {transform_indices = @transform_1, window_bounds = array<i64: 128, 128>}, {transform_indices = @transform_2, window_bounds = array<i64: 1, 128>}, {transform_indices = @transform_3, window_bounds = array<i64: 16, 128>}]} {
    %c0_i32 = arith.constant 0 : i32
    %0 = arith.cmpi eq, %arg2, %c0_i32 : i32
    %1 = arith.extui %0 : i1 to i32
    %c0_i32_0 = arith.constant 0 : i32
    %2 = arith.cmpi ne, %1, %c0_i32_0 : i32
    scf.if %2 {
      %c0_8 = arith.constant 0 : index
      %c0_9 = arith.constant 0 : index
      %9 = vector.load %arg5[%c0_8, %c0_9] : memref<1x128xf32, #tpu.memory_space<vmem>>, vector<1x128xf32>
      %10 = vector.shape_cast %9 : vector<1x128xf32> to vector<1x128xf32>
      %11 = vector.broadcast %10 : vector<1x128xf32> to vector<16x128xf32>
      %c0_10 = arith.constant 0 : index
      %c0_11 = arith.constant 0 : index
      %12 = vector.load %arg6[%c0_10, %c0_11] : memref<16x128xf32, #tpu.memory_space<vmem>>, vector<16x128xf32>
      tpu.vector_store %arg6[%c0_10, %c0_11], %11 {strides = array<i32>} : memref<16x128xf32, #tpu.memory_space<vmem>>, vector<16x128xf32>,
    } else {
    }
    %c0 = arith.constant 0 : index
    %c0_1 = arith.constant 0 : index
    %3 = vector.load %arg6[%c0, %c0_1] : memref<16x128xf32, #tpu.memory_space<vmem>>, vector<16x128xf32>
    %c0_2 = arith.constant 0 : index
    %c0_3 = arith.constant 0 : index
    %4 = vector.load %arg3[%c0_2, %c0_3] : memref<16x128xf32, #tpu.memory_space<vmem>>, vector<16x128xf32>
    %c0_4 = arith.constant 0 : index
    %c0_5 = arith.constant 0 : index
    %5 = vector.load %arg4[%c0_4, %c0_5] : memref<128x128xf32, #tpu.memory_space<vmem>>, vector<128x128xf32>
    %cst = arith.constant dense<0.000000e+00> : vector<16x128xf32>
    %6 = tpu.matmul %4, %5, %cst {dimension_numbers = #tpu.dot_dimension_numbers<[1], [1], [0], [0], [0, 0, 1, 0], [], []>} : vector<16x128xf32>, vector<128x128xf32>, vector<16x128xf32> -> vector<16x128xf32>
    %7 = arith.addf %3, %6 : vector<16x128xf32>
    %c0_6 = arith.constant 0 : index
    %c0_7 = arith.constant 0 : index
    %8 = vector.load %arg6[%c0_6, %c0_7] : memref<16x128xf32, #tpu.memory_space<vmem>>, vector<16x128xf32>
    tpu.vector_store %arg6[%c0_6, %c0_7], %7 {strides = array<i32>} : memref<16x128xf32, #tpu.memory_space<vmem>>, vector<16x128xf32>,
    return
  }
  func.func @transform_0(%arg0: i32, %arg1: i32, %arg2: i32) -> (i32, i32) {
    %c0_i32 = arith.constant 0 : i32
    return %arg0, %arg2 : i32, i32
  }
  func.func @transform_1(%arg0: i32, %arg1: i32, %arg2: i32) -> (i32, i32) {
    %c0_i32 = arith.constant 0 : i32
    return %arg1, %arg2 : i32, i32
  }
  func.func @transform_2(%arg0: i32, %arg1: i32, %arg2: i32) -> (i32, i32) {
    %c0_i32 = arith.constant 0 : i32
    %c0_i32_0 = arith.constant 0 : i32
    return %c0_i32, %arg1 : i32, i32
  }
  func.func @transform_3(%arg0: i32, %arg1: i32, %arg2: i32) -> (i32, i32) {
    %c0_i32 = arith.constant 0 : i32
    return %arg0, %arg1 : i32, i32
  }
}

</mosaic_0001>

<bundles_post_ra>
// kernel: column_parallel_linear.1
= control target key start
LH: loop header
LB: loop body
LE: loop exit
PB: predicated region body
PF: predicated region fallthrough
CT: control target
= control target key end

     0   :  { %s267_s1 = inlined_call_operand.vmem [shape: f32[128,128], index: 1, kind: input, shape index: {}]   ;;  %s268_s0 = inlined_call_operand.vmem [shape: f32[16,128], index: 0, kind: input, shape index: {}]   ;;  %s269_s2 = inlined_call_operand.vmem [shape: f32[1,128], index: 2, kind: input, shape index: {}]   ;;  %s270_s3 = inlined_call_operand.vmem [shape: f32[16,128], index: 3, kind: output, shape index: {}]  }
   0x1   :  { %v46_v0 = vld [vmem:[%s267_s1 + $0x78] sm:$0xff]  ;;  %v45_v1 = vld [vmem:[%s267_s1 + $0x70] sm:$0xff]  ;;  %v44_v2 = vld [vmem:[%s267_s1 + $0x68] sm:$0xff] }
   0x2   :  { %149 = vmatprep.subr.mxu0 %v46_v0  ;;  %v29_v3 = vld [vmem:[%s268_s0] sm:$0xff]  ;;  %v42_v5 = vld [vmem:[%s267_s1 + $0x58] sm:$0xff]  ;;  %v41_v6 = vld [vmem:[%s267_s1 + $0x50] sm:$0xff] }
   0x3   :  { %150 = vmatpush3.xpose.msra.mxu0 %v46_v0  ;;  %181 = vmatprep.mubr.f32.mxu0 %v29_v3  ;;  %v43_v4 = vld [vmem:[%s267_s1 + $0x60] sm:$0xff]  ;;  %v40_v7 = vld [vmem:[%s267_s1 + $0x48] sm:$0xff]  ;;  %v38_v9 = vld [vmem:[%s267_s1 + $0x38] sm:$0xff] }
   0x4   :  { %151 = vmatprep.subr.mxu0 %v45_v1  ;;  %v39_v8 = vld [vmem:[%s267_s1 + $0x40] sm:$0xff]  ;;  %v37_v10 = vld [vmem:[%s267_s1 + $0x30] sm:$0xff]  ;;  %v36_v11 = vld [vmem:[%s267_s1 + $0x28] sm:$0xff] }
   0x5   :  { %v35_v12 = vld [vmem:[%s267_s1 + $0x20] sm:$0xff]  ;;  %v34_v13 = vld [vmem:[%s267_s1 + $0x18] sm:$0xff]  ;;  %v33_v14 = vld [vmem:[%s267_s1 + $0x10] sm:$0xff] }
   0x6   :  { %v32_v15 = vld [vmem:[%s267_s1 + $0x8] sm:$0xff]  ;;  %v31_v16 = vld [vmem:[%s267_s1] sm:$0xff] }
   0x7   :  { %152 = vmatpush3.xpose.msra.mxu0 %v45_v1  ;;  %v30_v17 = vld [vmem:[%s268_s0 + $0x8] sm:$0xff]  ;;  %v130_v18 = vld [vmem:[%s269_s2] ss:$0 sm:$0xff] }
   0x8   :  { %153 = vmatprep.subr.mxu0 %v44_v2 }
   0xb   :  { %154 = vmatpush3.xpose.msra.mxu0 %v44_v2 }
   0xc   :  { %155 = vmatprep.subr.mxu0 %v43_v4 }
   0xf   :  { %156 = vmatpush3.xpose.msra.mxu0 %v43_v4 }
  0x10   :  { %157 = vmatprep.subr.mxu0 %v42_v5 }
  0x13   :  { %158 = vmatpush3.xpose.msra.mxu0 %v42_v5 }
  0x14   :  { %159 = vmatprep.subr.mxu0 %v41_v6 }
  0x17   :  { %160 = vmatpush3.xpose.msra.mxu0 %v41_v6 }
  0x18   :  { %161 = vmatprep.subr.mxu0 %v40_v7 }
  0x1b   :  { %162 = vmatpush3.xpose.msra.mxu0 %v40_v7 }
  0x1c   :  { %163 = vmatprep.subr.mxu0 %v39_v8 }
  0x1f   :  { %164 = vmatpush3.xpose.msra.mxu0 %v39_v8 }
  0x20   :  { %165 = vmatprep.subr.mxu0 %v38_v9 }
  0x23   :  { %166 = vmatpush3.xpose.msra.mxu0 %v38_v9 }
  0x24   :  { %167 = vmatprep.subr.mxu0 %v37_v10 }
  0x27   :  { %168 = vmatpush3.xpose.msra.mxu0 %v37_v10 }
  0x28   :  { %169 = vmatprep.subr.mxu0 %v36_v11 }
  0x2b   :  { %170 = vmatpush3.xpose.msra.mxu0 %v36_v11 }
  0x2c   :  { %171 = vmatprep.subr.mxu0 %v35_v12 }
  0x2f   :  { %172 = vmatpush3.xpose.msra.mxu0 %v35_v12 }
  0x30   :  { %173 = vmatprep.subr.mxu0 %v34_v13 }
  0x33   :  { %174 = vmatpush3.xpose.msra.mxu0 %v34_v13 }
  0x34   :  { %175 = vmatprep.subr.mxu0 %v33_v14 }
  0x37   :  { %176 = vmatpush3.xpose.msra.mxu0 %v33_v14 }
  0x38   :  { %177 = vmatprep.subr.mxu0 %v32_v15 }
  0x3b   :  { %178 = vmatpush3.xpose.msra.mxu0 %v32_v15 }
  0x3c   :  { %179 = vmatprep.subr.mxu0 %v31_v16 }
  0x3f   :  { %180 = vmatpush3.xpose.msra.mxu0 %v31_v16 }
  0x42   :  { %182 = vmatmul.mubr.f32.vlgmr.msra.gmra.mxu0 %v30_v17 }
 0x102   :  { %v183_v19 = vpop.f32.mrf.mxu0 }
 0x103   :  { %v123_v20 = vadd.f32 %v183_v19, %v130_v18 }
 0x104   :  { %v113_v21 = vpop.f32.mrf.mxu0 }
 0x105   :  { %125 = vst [vmem:[%s270_s3 + $0x8] sm:$0xff] %v123_v20  ;;  %v122_v22 = vadd.f32 %v130_v18, %v113_v21 }
 0x107   :  { %124 = vst [vmem:[%s270_s3] sm:$0xff] %v122_v22 }

</bundles_post_ra>
